<compile_context>
chip_gen: v5e
topology: v5e:2x2
jax: 0.10.0
libtpu: 0.0.40
codegen_flags: <defaults>
</compile_context>

<pallas_src>
from typing import NamedTuple

import jax
import jax.numpy as jnp
from jax.experimental import pallas as pl
from jax.experimental.pallas import tpu as pltpu


def _round_up(x, n):
    return ((x + n - 1) // n) * n


def _cdiv(a, b):
    return -(-a // b)


def _vmem_capacity_bytes():
    try:
        return int(pltpu.get_tpu_info().vmem_capacity_bytes)
    except Exception:
        return 64 << 20  # v7x per-core size; conservative and safe everywhere


class FFNPlan(NamedTuple):
    tm: int          # row tile over flattened (batch*seq)
    th: int          # hidden tile (== h_pad when single_k)
    h_pad: int       # padded hidden size
    single_k: bool   # True -> resident-weights path (no reduction grid axis)
    vmem_limit: int  # vmem_limit_bytes for the pallas_call


class FFNParams(NamedTuple):
    w1: jax.Array    # (d_model, h_pad)  compute dtype
    b1: jax.Array    # (1, h_pad)        f32
    w2: jax.Array    # (h_pad, d_model)  compute dtype
    b2: jax.Array    # (1, d_model)      f32
    hidden: int
    plan: FFNPlan


def _plan_ffn(d_model, hidden, isz, osz, tm, th_max, prefer_resident):
    cap = _vmem_capacity_bytes()
    budget = int(0.78 * cap)          # ~100 MiB on 128 MiB parts, ~50 MiB on v7x
    h128 = _round_up(hidden, 128)

    def footprint(th, with_acc):
        b = 2 * tm * d_model * isz                       # x tiles (double buffered)
        b += 2 * d_model * th * isz                      # W1 tiles
        b += 2 * th * d_model * isz                      # W2 tiles
        b += 2 * tm * d_model * osz                      # out tiles
        b += 2 * (_round_up(th, 128) + _round_up(d_model, 128)) * 4  # biases
        b += tm * th * 4                                 # h intermediate (f32)
        if with_acc:
            b += tm * d_model * 4                        # accumulator scratch
        return b

    headroom = 4 << 20

    if prefer_resident and footprint(h128, False) + headroom <= budget:
        limit = max(32 << 20,
                    min(int(0.9 * cap), footprint(h128, False) + (8 << 20)))
        return FFNPlan(tm=tm, th=h128, h_pad=h128, single_k=True, vmem_limit=limit)

    # Hidden-tiled path: shrink the tile until it fits, then rebalance so the
    # tile is a 128-multiple and padding waste is minimal (no round-to-512).
    th = _round_up(min(th_max, h128), 128)
    while th > 128 and footprint(th, True) + headroom > budget:
        th -= 128
    n_k = _cdiv(hidden, th)
    th = _round_up(_cdiv(hidden, n_k), 128)
    h_pad = th * n_k
    limit = max(32 << 20, min(int(0.9 * cap), footprint(th, True) + (8 << 20)))
    return FFNPlan(tm=tm, th=th, h_pad=h_pad, single_k=False, vmem_limit=limit)


def prepare_ffn_params(w1, b1, w2, b2, *, compute_dtype=jnp.bfloat16,
                       out_itemsize=4, tm=512, th_max=1024,
                       prefer_resident=True):
    """One-time parameter preparation: cast weights to the MXU operand dtype,
    reshape biases, and zero-pad the hidden dimension to the planned tile.

    Doing this once (instead of per forward call) keeps the pallas_call the only
    HBM consumer at inference time.
    """
    d_model, hidden = w1.shape
    cdt = jnp.dtype(compute_dtype)
    plan = _plan_ffn(d_model, hidden, cdt.itemsize, out_itemsize, tm, th_max,
                     prefer_resident)

    w1c = w1.astype(cdt)
    w2c = w2.astype(cdt)
    b1f = b1.astype(jnp.float32).reshape(1, hidden)
    b2f = b2.astype(jnp.float32).reshape(1, d_model)
    if plan.h_pad != hidden:
        pad = plan.h_pad - hidden
        # Zero padding is exact: padded hidden units give ReLU(0 + 0) = 0 and the
        # matching zero rows of W2 contribute nothing.
        w1c = jnp.pad(w1c, ((0, 0), (0, pad)))
        b1f = jnp.pad(b1f, ((0, 0), (0, pad)))
        w2c = jnp.pad(w2c, ((0, pad), (0, 0)))
    return FFNParams(w1c, b1f, w2c, b2f, hidden, plan)


# ---------------------------------------------------------------------------
# Kernels
# ---------------------------------------------------------------------------

def _ffn_kernel_fused(x_ref, w1_ref, b1_ref, w2_ref, b2_ref, o_ref):
    # Resident-weights path: whole hidden dimension in one step, no accumulator.
    h = jnp.dot(x_ref[...], w1_ref[...], preferred_element_type=jnp.float32)
    h = jnp.maximum(h + b1_ref[...], 0.0)
    # Dropout (eval mode) == identity.
    out = jnp.dot(h.astype(w2_ref.dtype), w2_ref[...],
                  preferred_element_type=jnp.float32)
    o_ref[...] = (out + b2_ref[...]).astype(o_ref.dtype)


def _ffn_kernel_tiled(x_ref, w1_ref, b1_ref, w2_ref, b2_ref, o_ref, acc_ref):
    # Hidden-tiled path: reduction over the hidden axis with a f32 accumulator.
    k = pl.program_id(1)

    @pl.when(k == 0)
    def _init():
        # Fold the second bias into the accumulator init (no per-step add).
        acc_ref[...] = jnp.broadcast_to(b2_ref[...], acc_ref.shape)

    h = jnp.dot(x_ref[...], w1_ref[...], preferred_element_type=jnp.float32)
    h = jnp.maximum(h + b1_ref[...], 0.0)
    # Dropout (eval mode) == identity.
    acc_ref[...] += jnp.dot(h.astype(w2_ref.dtype), w2_ref[...],
                            preferred_element_type=jnp.float32)

    @pl.when(k == pl.num_programs(1) - 1)
    def _store():
        o_ref[...] = acc_ref[...].astype(o_ref.dtype)


# ---------------------------------------------------------------------------
# Wrapper
# ---------------------------------------------------------------------------

def positionwise_feed_forward(x, params: FFNParams):
    """Transformer FFN: ReLU(x @ W1 + b1) @ W2 + b2 (dropout = identity).

    x: (batch, seq, d_model); params: output of prepare_ffn_params.
    """
    batch, seq, d_model = x.shape
    plan = params.plan
    h_pad = plan.h_pad
    out_dtype = x.dtype
    cdt = params.w1.dtype

    m = batch * seq
    tm_eff = min(plan.tm, _round_up(m, 8))
    n_rows = _cdiv(m, tm_eff)
    # v7x megacore: make sure the parallel row axis has >= 2 tiles when m is
    # large enough to be worth splitting across the two TensorCores.
    if n_rows == 1 and m > 256:
        tm_eff = _round_up(_cdiv(m, 2), 8)
        n_rows = _cdiv(m, tm_eff)
    m_pad = n_rows * tm_eff

    x2d = x.reshape(m, d_model).astype(cdt)
    if m_pad != m:
        x2d = jnp.pad(x2d, ((0, m_pad - m), (0, 0)))

    isz = jnp.dtype(cdt).itemsize
    osz = jnp.dtype(out_dtype).itemsize
    flops = 4 * m_pad * d_model * h_pad
    bytes_accessed = (x2d.size * isz + params.w1.size * isz
                      + params.w2.size * isz + params.b1.size * 4
                      + params.b2.size * 4 + m_pad * d_model * osz)
    cost = pl.CostEstimate(flops=int(flops), transcendentals=0,
                           bytes_accessed=int(bytes_accessed))

    if plan.single_k:
        out2d = pl.pallas_call(
            _ffn_kernel_fused,
            out_shape=jax.ShapeDtypeStruct((m_pad, d_model), out_dtype),
            grid_spec=pltpu.PrefetchScalarGridSpec(
                num_scalar_prefetch=0,
                grid=(n_rows,),
                in_specs=[
                    pl.BlockSpec((tm_eff, d_model), lambda i: (i, 0)),   # x rows
                    pl.BlockSpec((d_model, h_pad), lambda i: (0, 0)),    # W1 (resident)
                    pl.BlockSpec((1, h_pad), lambda i: (0, 0)),          # b1
                    pl.BlockSpec((h_pad, d_model), lambda i: (0, 0)),    # W2 (resident)
                    pl.BlockSpec((1, d_model), lambda i: (0, 0)),        # b2
                ],
                out_specs=pl.BlockSpec((tm_eff, d_model), lambda i: (i, 0)),
            ),
            compiler_params=pltpu.CompilerParams(
                dimension_semantics=("parallel",),
                vmem_limit_bytes=plan.vmem_limit,
            ),
            cost_estimate=cost,
        )(x2d, params.w1, params.b1, params.w2, params.b2)
    else:
        th = plan.th
        out2d = pl.pallas_call(
            _ffn_kernel_tiled,
            out_shape=jax.ShapeDtypeStruct((m_pad, d_model), out_dtype),
            grid_spec=pltpu.PrefetchScalarGridSpec(
                num_scalar_prefetch=0,
                grid=(n_rows, h_pad // th),
                in_specs=[
                    pl.BlockSpec((tm_eff, d_model), lambda i, k: (i, 0)),  # x rows
                    pl.BlockSpec((d_model, th), lambda i, k: (0, k)),      # W1 cols
                    pl.BlockSpec((1, th), lambda i, k: (0, k)),            # b1
                    pl.BlockSpec((th, d_model), lambda i, k: (k, 0)),      # W2 rows
                    pl.BlockSpec((1, d_model), lambda i, k: (0, 0)),       # b2
                ],
                out_specs=pl.BlockSpec((tm_eff, d_model), lambda i, k: (i, 0)),
                scratch_shapes=[pltpu.VMEM((tm_eff, d_model), jnp.float32)],
            ),
            compiler_params=pltpu.CompilerParams(
                dimension_semantics=("parallel", "arbitrary"),
                vmem_limit_bytes=plan.vmem_limit,
            ),
            cost_estimate=cost,
        )(x2d, params.w1, params.b1, params.w2, params.b2)

    return out2d[:m].reshape(batch, seq, d_model)


# ---------------------------------------------------------------------------
# Reference / init helpers
# ---------------------------------------------------------------------------

def init_params(key, d_model, hidden, dtype=jnp.float32):
    """nn.Linear-style uniform(-1/sqrt(fan_in), 1/sqrt(fan_in)) init.
    Weights are returned already transposed to (in, out) for the kernel."""
    k1, k2, k3, k4 = jax.random.split(key, 4)
    bound1 = 1.0 / jnp.sqrt(d_model)
    bound2 = 1.0 / jnp.sqrt(hidden)
    w1 = jax.random.uniform(k1, (d_model, hidden), dtype, -bound1, bound1)
    b1 = jax.random.uniform(k2, (hidden,), dtype, -bound1, bound1)
    w2 = jax.random.uniform(k3, (hidden, d_model), dtype, -bound2, bound2)
    b2 = jax.random.uniform(k4, (d_model,), dtype, -bound2, bound2)
    return w1, b1, w2, b2


def ref_ffn(x, w1, b1, w2, b2):
    h = jnp.maximum(
        jnp.einsum("bsd,dh->bsh", x, w1, precision=jax.lax.Precision.HIGHEST) + b1,
        0.0)
    return jnp.einsum("bsh,hd->bsd", h, w2,
                      precision=jax.lax.Precision.HIGHEST) + b2


if __name__ == "__main__":
    # --- small demo shapes (toy config of the module) ---
    batch, seq, d_model, hidden = 2, 8, 32, 64
    key = jax.random.PRNGKey(0)
    kx, kp = jax.random.split(key)
    x = jax.random.normal(kx, (batch, seq, d_model), jnp.float32)
    w1, b1, w2, b2 = init_params(kp, d_model, hidden)
    ref = ref_ffn(x, w1, b1, w2, b2)

    # f32-operand path (tightest numerics)
    params_f32 = prepare_ffn_params(w1, b1, w2, b2, compute_dtype=jnp.float32)
    out_f32 = jax.block_until_ready(positionwise_feed_forward(x, params_f32))
    assert out_f32.shape == (batch, seq, d_model)
    assert jnp.allclose(out_f32, ref, atol=2e-2, rtol=2e-2), \
        float(jnp.max(jnp.abs(out_f32 - ref)))

    # default bf16-operand path (f32 accumulation)
    params_bf16 = prepare_ffn_params(w1, b1, w2, b2)
    out_bf16 = jax.block_until_ready(positionwise_feed_forward(x, params_bf16))
    assert jnp.allclose(out_bf16, ref, atol=1e-1, rtol=1e-1), \
        float(jnp.max(jnp.abs(out_bf16 - ref)))

    # --- medium shapes: exercises multi-tile rows, row padding, the resident
    #     weights path, and the forced hidden-tiled (accumulator) path ---
    batch2, seq2, d_model2, hidden2 = 2, 300, 128, 640
    kx2, kp2 = jax.random.split(jax.random.PRNGKey(1))
    x2 = jax.random.normal(kx2, (batch2, seq2, d_model2), jnp.float32)
    w1b, b1b, w2b, b2b = init_params(kp2, d_model2, hidden2)
    ref2 = ref_ffn(x2, w1b, b1b, w2b, b2b)

    params2 = prepare_ffn_params(w1b, b1b, w2b, b2b)  # resident-weights path
    params2_tiled = prepare_ffn_params(                # forced hidden-tiled path
        w1b, b1b, w2b, b2b, prefer_resident=False, th_max=256)

    out2 = positionwise_feed_forward(x2, params2)
    out2_tiled = positionwise_feed_forward(x2, params2_tiled)
    out2, out2_tiled = jax.block_until_ready((out2, out2_tiled))

    assert out2.shape == (batch2, seq2, d_model2)
    assert jnp.allclose(out2, ref2, atol=1e-1, rtol=1e-1), \
        float(jnp.max(jnp.abs(out2 - ref2)))
    assert jnp.allclose(out2_tiled, ref2, atol=1e-1, rtol=1e-1), \
        float(jnp.max(jnp.abs(out2_tiled - ref2)))

    print("KERNEL_OK")
</pallas_src>

<mosaic_0001>
module attributes {stable_mosaic.version = 11 : i64} {
  func.func @_ffn_kernel_fused(%arg0: i32, %arg1: memref<16x32xf32, #tpu.memory_space<vmem>>, %arg2: memref<32x128xf32, #tpu.memory_space<vmem>>, %arg3: memref<1x128xf32, #tpu.memory_space<vmem>>, %arg4: memref<128x32xf32, #tpu.memory_space<vmem>>, %arg5: memref<1x32xf32, #tpu.memory_space<vmem>>, %arg6: memref<16x32xf32, #tpu.memory_space<vmem>>) attributes {dimension_semantics = [#tpu.dimension_semantics<parallel>], iteration_bounds = array<i64: 1>, scalar_prefetch = 0 : i64, scratch_operands = 0 : i64, tpu.core_type = #tpu.core_type<tc>, window_params = [{transform_indices = @transform_0, window_bounds = array<i64: 16, 32>}, {pipeline_mode = #tpu.pipeline_mode<synchronous>, transform_indices = @transform_1, window_bounds = array<i64: 32, 128>}, {pipeline_mode = #tpu.pipeline_mode<synchronous>, transform_indices = @transform_2, window_bounds = array<i64: 1, 128>}, {pipeline_mode = #tpu.pipeline_mode<synchronous>, transform_indices = @transform_3, window_bounds = array<i64: 128, 32>}, {pipeline_mode = #tpu.pipeline_mode<synchronous>, transform_indices = @transform_4, window_bounds = array<i64: 1, 32>}, {transform_indices = @transform_5, window_bounds = array<i64: 16, 32>}]} {
    %c0 = arith.constant 0 : index
    %c0_0 = arith.constant 0 : index
    %0 = vector.load %arg1[%c0, %c0_0] : memref<16x32xf32, #tpu.memory_space<vmem>>, vector<16x32xf32>
    %c0_1 = arith.constant 0 : index
    %c0_2 = arith.constant 0 : index
    %1 = vector.load %arg2[%c0_1, %c0_2] : memref<32x128xf32, #tpu.memory_space<vmem>>, vector<32x128xf32>
    %cst = arith.constant dense<0.000000e+00> : vector<16x128xf32>
    %2 = tpu.matmul %0, %1, %cst {dimension_numbers = #tpu.dot_dimension_numbers<[1], [0], [0], [1], [0, 0, 1, 1], [], []>} : vector<16x32xf32>, vector<32x128xf32>, vector<16x128xf32> -> vector<16x128xf32>
    %c0_3 = arith.constant 0 : index
    %c0_4 = arith.constant 0 : index
    %3 = vector.load %arg3[%c0_3, %c0_4] : memref<1x128xf32, #tpu.memory_space<vmem>>, vector<1x128xf32>
    %4 = vector.broadcast %3 : vector<1x128xf32> to vector<16x128xf32>
    %5 = arith.addf %2, %4 : vector<16x128xf32>
    %cst_5 = arith.constant 0.000000e+00 : f32
    %6 = vector.broadcast %cst_5 : f32 to vector<16x128xf32>
    %7 = arith.maximumf %5, %6 : vector<16x128xf32>
    %c0_6 = arith.constant 0 : index
    %c0_7 = arith.constant 0 : index
    %8 = vector.load %arg4[%c0_6, %c0_7] : memref<128x32xf32, #tpu.memory_space<vmem>>, vector<128x32xf32>
    %cst_8 = arith.constant dense<0.000000e+00> : vector<16x32xf32>
    %9 = tpu.matmul %7, %8, %cst_8 {dimension_numbers = #tpu.dot_dimension_numbers<[1], [0], [0], [1], [0, 0, 1, 1], [], []>} : vector<16x128xf32>, vector<128x32xf32>, vector<16x32xf32> -> vector<16x32xf32>
    %c0_9 = arith.constant 0 : index
    %c0_10 = arith.constant 0 : index
    %10 = vector.load %arg5[%c0_9, %c0_10] : memref<1x32xf32, #tpu.memory_space<vmem>>, vector<1x32xf32>
    %11 = vector.broadcast %10 : vector<1x32xf32> to vector<16x32xf32>
    %12 = arith.addf %9, %11 : vector<16x32xf32>
    %c0_11 = arith.constant 0 : index
    %c0_12 = arith.constant 0 : index
    %13 = vector.load %arg6[%c0_11, %c0_12] : memref<16x32xf32, #tpu.memory_space<vmem>>, vector<16x32xf32>
    tpu.vector_store %arg6[%c0_11, %c0_12], %12 {strides = array<i32>} : memref<16x32xf32, #tpu.memory_space<vmem>>, vector<16x32xf32>,
    return
  }
  func.func @transform_0(%arg0: i32) -> (i32, i32) {
    %c0_i32 = arith.constant 0 : i32
    %c0_i32_0 = arith.constant 0 : i32
    return %arg0, %c0_i32 : i32, i32
  }
  func.func @transform_1(%arg0: i32) -> (i32, i32) {
    %c0_i32 = arith.constant 0 : i32
    %c0_i32_0 = arith.constant 0 : i32
    %c0_i32_1 = arith.constant 0 : i32
    return %c0_i32, %c0_i32_0 : i32, i32
  }
  func.func @transform_2(%arg0: i32) -> (i32, i32) {
    %c0_i32 = arith.constant 0 : i32
    %c0_i32_0 = arith.constant 0 : i32
    %c0_i32_1 = arith.constant 0 : i32
    return %c0_i32, %c0_i32_0 : i32, i32
  }
  func.func @transform_3(%arg0: i32) -> (i32, i32) {
    %c0_i32 = arith.constant 0 : i32
    %c0_i32_0 = arith.constant 0 : i32
    %c0_i32_1 = arith.constant 0 : i32
    return %c0_i32, %c0_i32_0 : i32, i32
  }
  func.func @transform_4(%arg0: i32) -> (i32, i32) {
    %c0_i32 = arith.constant 0 : i32
    %c0_i32_0 = arith.constant 0 : i32
    %c0_i32_1 = arith.constant 0 : i32
    return %c0_i32, %c0_i32_0 : i32, i32
  }
  func.func @transform_5(%arg0: i32) -> (i32, i32) {
    %c0_i32 = arith.constant 0 : i32
    %c0_i32_0 = arith.constant 0 : i32
    return %arg0, %c0_i32 : i32, i32
  }
}

</mosaic_0001>

<bundles_post_ra>
// kernel: tpu_custom_call.1
= control target key start
LH: loop header
LB: loop body
LE: loop exit
PB: predicated region body
PF: predicated region fallthrough
CT: control target
= control target key end

     0   :  { %vm31_vm0 = vcmask 261120   ;;  %s287_s0 = inlined_call_operand.vmem [shape: f32[16,32], index: 0, kind: input, shape index: {}]   ;;  %s288_s1 = inlined_call_operand.vmem [shape: f32[32,128], index: 1, kind: input, shape index: {}]   ;;  %s289_s2 = inlined_call_operand.vmem [shape: f32[1,128], index: 2, kind: input, shape index: {}]   ;;  %s290_s3 = inlined_call_operand.vmem [shape: f32[128,32], index: 3, kind: input, shape index: {}]   ;;  %s291_s4 = inlined_call_operand.vmem [shape: f32[1,32], index: 4, kind: input, shape index: {}]   ;;  %s292_s5 = inlined_call_operand.hbm [shape: f32[16,32], index: 5, kind: output, shape index: {}]  }
   0x1   :  { %v26_v0 = vld [vmem:[%s288_s1 + $0x18] sm:$0xff]  ;;  %v25_v1 = vld [vmem:[%s288_s1 + $0x10] sm:$0xff]  ;;  %v24_v2 = vld [vmem:[%s288_s1 + $0x8] sm:$0xff] }
   0x2   :  { %50 = vmatpush.msra.mxu0 %v26_v0  ;;  %v78_v3 = vld [vmem:[%s290_s3 + $0x78] sm:$0xff]  ;;  %v77_v4 = vld [vmem:[%s290_s3 + $0x70] sm:$0xff]  ;;  %v23_v5 = vld [vmem:[%s288_s1] sm:$0xff] }
   0x3   :  { %83 = vmatpush.msra.mxu1 %v78_v3  ;;  %v76_v6 = vld [vmem:[%s290_s3 + $0x68] sm:$0xff]  ;;  %128 = vmatpush.msra.mxu2 %v78_v3  ;;  %v21_v7 = vld [vmem:[%s287_s0] sm:$0xff] }
   0x4   :  { %51 = vmatpush.msra.mxu0 %v25_v1  ;;  %v75_v8 = vld [vmem:[%s290_s3 + $0x60] sm:$0xff] }
   0x5   :  { %84 = vmatpush.msra.mxu1 %v77_v4  ;;  %129 = vmatpush.msra.mxu2 %v77_v4 }
   0x6   :  { %52 = vmatpush.msra.mxu0 %v24_v2 }
   0x7   :  { %85 = vmatpush.msra.mxu1 %v76_v6 }
   0x8   :  { %53 = vmatpush.msra.mxu0 %v23_v5 }
   0x9   :  { %10 = vsyncpa [#allocation3], 0  ;;  %126 = vmatmul.msk.f32.vlgmr.msra.gmra.mxu0 %vm31_vm0, %v21_v7  ;;  %v74_v9 = vld [vmem:[%s290_s3 + $0x58] sm:$0xff]  ;;  %130 = vmatpush.msra.mxu2 %v76_v6  ;;  %v73_v10 = vld [vmem:[%s290_s3 + $0x50] sm:$0xff]  ;;  %s114_s15 = sshll.u32 %s292_s5, 4  ;;  %s176_s16 = smov 128   ;;  %s115_s15 = int_to_ptr.hbm [resolvable:$true] %s114_s15 }
   0xa   :  { %86 = vmatpush.msra.mxu1 %v75_v8  ;;  %v72_v11 = vld [vmem:[%s290_s3 + $0x48] sm:$0xff]  ;;  %v71_v13 = vld [vmem:[%s290_s3 + $0x40] sm:$0xff]  ;;  %v70_v14 = vld [vmem:[%s290_s3 + $0x38] sm:$0xff]  ;;  %s177_s17 = smov 8  }
   0xb   :  { %131 = vmatpush.msra.mxu2 %v75_v8  ;;  %v22_v12 = vld [vmem:[%s287_s0 + $0x8] sm:$0xff]  ;;  %v69_v15 = vld [vmem:[%s290_s3 + $0x30] sm:$0xff]  ;;  %v67_v17 = vld [vmem:[%s290_s3 + $0x20] sm:$0xff] }
   0xc   :  { %87 = vmatpush.msra.mxu1 %v74_v9  ;;  %v68_v16 = vld [vmem:[%s290_s3 + $0x28] sm:$0xff]  ;;  %v66_v18 = vld [vmem:[%s290_s3 + $0x18] sm:$0xff]  ;;  %v65_v19 = vld [vmem:[%s290_s3 + $0x10] sm:$0xff] }
   0xd   :  { %132 = vmatpush.msra.mxu2 %v74_v9  ;;  %v64_v20 = vld [vmem:[%s290_s3 + $0x8] sm:$0xff]  ;;  %v63_v21 = vld [vmem:[%s290_s3] sm:$0xff]  ;;  %s175_s3 = smov [#allocation2]  }
   0xe   :  { %88 = vmatpush.msra.mxu1 %v73_v10  ;;  %v147_v22 = vld [vmem:[%s289_s2] ss:$0 sm:$0xff]  ;;  %s112_s13 = sshll.u32 %s175_s3, 4  ;;  %s113_s13 = int_to_ptr.vmem [resolvable:$true] %s112_s13 }
   0xf   :  { %133 = vmatpush.msra.mxu2 %v73_v10  ;;  %v148_v29 = vld [vmem:[%s291_s4] ss:$0 sm:$0xff] }
  0x10   :  { %89 = vmatpush.msra.mxu1 %v72_v11 }
  0x11   :  { %127 = vmatmul.msk.f32.gmra.mxu0 %vm31_vm0, %v22_v12  ;;  %134 = vmatpush.msra.mxu2 %v72_v11 }
  0x12   :  { %90 = vmatpush.msra.mxu1 %v71_v13 }
  0x13   :  { %135 = vmatpush.msra.mxu2 %v71_v13 }
  0x14   :  { %91 = vmatpush.msra.mxu1 %v70_v14 }
  0x15   :  { %136 = vmatpush.msra.mxu2 %v70_v14 }
  0x16   :  { %92 = vmatpush.msra.mxu1 %v69_v15 }
  0x17   :  { %137 = vmatpush.msra.mxu2 %v69_v15 }
  0x18   :  { %93 = vmatpush.msra.mxu1 %v68_v16 }
  0x19   :  { %138 = vmatpush.msra.mxu2 %v68_v16 }
  0x1a   :  { %94 = vmatpush.msra.mxu1 %v67_v17 }
  0x1b   :  { %139 = vmatpush.msra.mxu2 %v67_v17 }
  0x1c   :  { %95 = vmatpush.msra.mxu1 %v66_v18 }
  0x1d   :  { %140 = vmatpush.msra.mxu2 %v66_v18 }
  0x1e   :  { %96 = vmatpush.msra.mxu1 %v65_v19 }
  0x1f   :  { %141 = vmatpush.msra.mxu2 %v65_v19 }
  0x20   :  { %97 = vmatpush.msra.mxu1 %v64_v20 }
  0x21   :  { %142 = vmatpush.msra.mxu2 %v64_v20 }
  0x22   :  { %98 = vmatpush.msra.mxu1 %v63_v21 }
  0x23   :  { %143 = vmatpush.msra.mxu2 %v63_v21 }
  0x86   :  { %v55_v23 = vpop.f32.mrf.mxu0 }
  0x87   :  { %v56_v24 = vadd.f32 %v147_v22, %v55_v23 }
  0x89   :  { %v61_v25 = vmax.f32 %v56_v24, 0.0 }
  0x8b   :  { %99 = vmatmul.f32.vlgmr.msra.gmra.mxu1 %v61_v25 }
  0x8e   :  { %v58_v26 = vpop.f32.mrf.mxu0 }
  0x8f   :  { %v59_v27 = vadd.f32 %v147_v22, %v58_v26 }
  0x91   :  { %v62_v28 = vmax.f32 %v59_v27, 0.0 }
  0x93   :  { %102 = vmatmul.f32.vlgmr.msra.gmra.mxu2 %v62_v28 }
 0x108   :  { %v100_v30 = vpop.f32.mrf.mxu1 }
 0x109   :  { %v101_v31 = vadd.f32 %v148_v29, %v100_v30 }
 0x10b   :  { %106 = vst.msk [vmem:[#allocation2] sm:$0xff] %vm31_vm0, %v101_v31 }
 0x116   :  { %v103_v32 = vpop.f32.mrf.mxu2 }
 0x117   :  { %v104_v33 = vadd.f32 %v148_v29, %v103_v32 }
 0x119   :  { %107 = vst.msk [vmem:[#allocation2 + $0x8] sm:$0xff] %vm31_vm0, %v104_v33 }
 0x11a   :  { %120 = dma.vmem_to_hbm [thread:$0]  %s113_s13, 256, %s115_s15, [#allocation3], %s176_s16, %s176_s16, %s177_s17  }
 0x11b   :  { %173 = dma.done.wait [#allocation3], 256  }
 0x11c   :  { %174 = vsyncadd [#allocation3], 4294967040 }
 0x11d   :  { %125 = vsyncpa [#allocation3], 1 }

</bundles_post_ra>
